<compile_context>
chip_gen: v7x
topology: tpu7x:2x2x1
jax: 0.10.0
libtpu: 0.0.40
codegen_flags: <defaults>
</compile_context>

<pallas_src>
import functools

import jax
import jax.numpy as jnp
from jax.experimental import pallas as pl
from jax.experimental.pallas import tpu as pltpu

_LANE = 128                 # vreg lane width
_FEAT_TILE_CAP = 2048       # max feature-tile width (lanes) per block
_MIN_FEAT_TILE = 4 * _LANE  # keep per-row DMA chunks >= 2 KiB (f32)


def _round_up(x, m):
    return ((x + m - 1) // m) * m


@functools.lru_cache(maxsize=1)
def _hw_params():
    """Return (vmem_buffer_budget, vmem_limit_bytes, multi_tensorcore)."""
    vmem = 64 << 20                       # conservative default (v7x per-TC)
    try:
        vmem = int(getattr(pltpu.get_tpu_info(), "vmem_capacity_bytes", vmem))
    except Exception:
        pass
    multi_tc = vmem <= (64 << 20)         # v7x-class: 64 MiB/TC, 2 TCs/chip
    budget = max(12 << 20, (3 * vmem) // 10)   # ~19 MiB v7x, ~38 MiB v5e/v6e
    limit = max(32 << 20, (3 * vmem) // 5)     # ~38 MiB v7x, ~76 MiB v5e/v6e
    return budget, limit, multi_tc


def _masked(x, s, value):
    # Original two-product form: exact passthrough of x where S == 1, same
    # numerics as the PyTorch module.  `value` pinned to the input dtype so
    # bf16 inputs stay bf16 (no f32 promotion on the VPU path).
    v = jnp.asarray(value, dtype=x.dtype)
    one = jnp.ones((), dtype=x.dtype)
    return x * s + v * (one - s)


def _mask1d_kernel(x_ref, s_ref, o_ref, *, value):
    o_ref[...] = _masked(x_ref[...], s_ref[...], value).astype(o_ref.dtype)


def _mask1d_append_halves_kernel(x_ref, s_ref, o_ref, *, value):
    # grid = (batch_tiles, feat_tiles, 2); the innermost ("arbitrary") axis
    # selects which half of the concatenated output this (bt, ft) block lands
    # in.  Every store is a full lane-dense block, and the x/S input blocks
    # stay resident (same block index) across the two halves -> no re-fetch.
    h = pl.program_id(2)

    @pl.when(h == 0)
    def _():
        o_ref[...] = _masked(x_ref[...], s_ref[...], value).astype(o_ref.dtype)

    @pl.when(h == 1)
    def _():
        o_ref[...] = s_ref[...].astype(o_ref.dtype)


def _pick_append_ft(f_pad, itemsize, budget):
    """Feature tile for the append path: (ft, f_work) with f_work % ft == 0."""
    sub = max(8, 32 // itemsize)
    cap = min(f_pad, _FEAT_TILE_CAP)
    ft = (cap // _LANE) * _LANE
    while ft >= _MIN_FEAT_TILE:            # never collapse to skinny tiles
        if f_pad % ft == 0:
            return ft, f_pad
        ft -= _LANE
    # No decent divisor: use one full-F block if it fits the VMEM budget at
    # the minimum sublane count, otherwise pad F up to a tile-cap multiple.
    if 2 * 3 * f_pad * itemsize * sub <= budget:
        return f_pad, f_pad
    return _FEAT_TILE_CAP, _round_up(f_pad, _FEAT_TILE_CAP)


def _pick_bt(B, ft, itemsize, budget, multi_tc, n_feat_blocks, total_bytes):
    """Batch-tile height from the VMEM byte budget (double-buffered x,S,out)."""
    sub = max(8, 32 // itemsize)           # 8 f32, 16 bf16, 32 int8
    bytes_per_row = 2 * 3 * ft * itemsize  # x + S + out tiles, double-buffered
    bt_max = max(sub, int(budget // bytes_per_row))
    bt = B if B <= bt_max else max(sub, (bt_max // sub) * sub)
    # Multi-TensorCore chips (v7x) only: keep >= 2 parallel grid steps so both
    # TCs (and their DMA paths) get work.  Prefer splitting the batch axis.
    if (multi_tc and total_bytes >= (1 << 20)
            and pl.cdiv(B, bt) * n_feat_blocks < 2 and B > sub):
        bt = max(sub, _round_up(pl.cdiv(B, 2), sub))
    return bt


def mask_layer_1d(x, S, *, value, append):
    """Pallas implementation of MaskLayer1d.forward((x, S))."""
    assert x.shape == S.shape and x.ndim == 2
    B, F = x.shape
    dtype = x.dtype
    itemsize = jnp.dtype(dtype).itemsize
    budget, vmem_limit, multi_tc = _hw_params()
    total_bytes = B * F * itemsize

    if not append:
        # Plain masking: tile both axes; only the single feature edge block
        # (when F % 128 != 0) is masked.
        ft = min(_FEAT_TILE_CAP, _round_up(F, _LANE))
        nf = pl.cdiv(F, ft)
        bt = _pick_bt(B, ft, itemsize, budget, multi_tc, nf, total_bytes)
        # v7x: batch too small to split -> split the feature axis instead.
        if (multi_tc and total_bytes >= (1 << 20)
                and pl.cdiv(B, bt) * nf < 2 and ft > _LANE):
            ft = _round_up(ft // 2, _LANE)
            nf = pl.cdiv(F, ft)

        cost = pl.CostEstimate(flops=4 * B * F, transcendentals=0,
                               bytes_accessed=3 * B * F * itemsize)
        return pl.pallas_call(
            functools.partial(_mask1d_kernel, value=value),
            out_shape=jax.ShapeDtypeStruct((B, F), dtype),
            grid_spec=pltpu.PrefetchScalarGridSpec(
                num_scalar_prefetch=0,
                grid=(pl.cdiv(B, bt), nf),
                in_specs=[pl.BlockSpec((bt, ft), lambda i, j: (i, j)),
                          pl.BlockSpec((bt, ft), lambda i, j: (i, j))],
                out_specs=pl.BlockSpec((bt, ft), lambda i, j: (i, j)),
            ),
            compiler_params=pltpu.CompilerParams(
                dimension_semantics=("parallel", "parallel"),
                vmem_limit_bytes=vmem_limit,
            ),
            cost_estimate=cost,
        )(x, S)

    # ---- append path: lane-aligned "halves" kernel on a (padded) feature axis.
    f_pad = _round_up(F, _LANE)
    ft, f_work = _pick_append_ft(f_pad, itemsize, budget)
    nf = f_work // ft
    bt = _pick_bt(B, ft, itemsize, budget, multi_tc, nf, total_bytes)
    # v7x: batch too small to split -> split the feature tile (halving keeps
    # the exact-divisor property since ft stays a lane multiple dividing f_work).
    if (multi_tc and total_bytes >= (1 << 20)
            and pl.cdiv(B, bt) * nf < 2 and ft % (2 * _LANE) == 0):
        ft //= 2
        nf = f_work // ft

    xw, sw = x, S
    if f_work != F:
        # Cheap wrapper-side layout plumbing (rare, unaligned-F path only):
        # pad the feature axis so every kernel store is a full lane-dense block.
        pad = ((0, 0), (0, f_work - F))
        xw = jnp.pad(x, pad)
        sw = jnp.pad(S, pad)

    cost = pl.CostEstimate(flops=4 * B * f_work, transcendentals=0,
                           bytes_accessed=4 * B * f_work * itemsize)
    out = pl.pallas_call(
        functools.partial(_mask1d_append_halves_kernel, value=value),
        out_shape=jax.ShapeDtypeStruct((B, 2 * f_work), dtype),
        grid_spec=pltpu.PrefetchScalarGridSpec(
            num_scalar_prefetch=0,
            grid=(pl.cdiv(B, bt), nf, 2),
            in_specs=[pl.BlockSpec((bt, ft), lambda i, j, h: (i, j)),
                      pl.BlockSpec((bt, ft), lambda i, j, h: (i, j))],
            out_specs=pl.BlockSpec((bt, ft), lambda i, j, h: (i, h * nf + j)),
        ),
        compiler_params=pltpu.CompilerParams(
            dimension_semantics=("parallel", "parallel", "arbitrary"),
            vmem_limit_bytes=vmem_limit,
        ),
        cost_estimate=cost,
    )(xw, sw)

    if f_work != F:
        out = jnp.concatenate([out[:, :F], out[:, f_work:f_work + F]], axis=1)
    return out


def mask_layer_1d_ref(x, S, *, value, append):
    out = x * S + value * (1 - S)
    if append:
        out = jnp.concatenate([out, S], axis=1)
    return out


if __name__ == "__main__":
    # MaskLayer1d has no learned parameters; its "config" is (value, append).
    VALUE = 0.5
    key = jax.random.PRNGKey(0)
    kx, ks = jax.random.split(key)

    # Small shapes exercising every code path:
    #   (8, 128)   single lane-aligned block
    #   (20, 256)  full-B block with B not a multiple of 8
    #   (9, 200)   unaligned F -> padded halves path + cdiv edge block
    #   (16, 4096) two feature tiles -> append half-offset h*nf + j
    #   (8, 128) bf16  dtype pinning of `value`
    cases = [
        ((8, 128), jnp.float32),
        ((20, 256), jnp.float32),
        ((9, 200), jnp.float32),
        ((16, 4096), jnp.float32),
        ((8, 128), jnp.bfloat16),
    ]

    ok = True
    for (B, F), dt in cases:
        x = jax.random.normal(kx, (B, F), dtype=jnp.float32).astype(dt)
        # binary mask S in {0, 1}, same dtype as x (as in fastshap usage)
        S = (jax.random.uniform(ks, (B, F)) > 0.5).astype(dt)
        for append in (True, False):
            out = mask_layer_1d(x, S, value=VALUE, append=append)
            out = jax.block_until_ready(out)
            ref = mask_layer_1d_ref(x, S, value=VALUE, append=append)
            tol = 1e-5 if dt == jnp.float32 else 2e-2
            if out.shape != ref.shape or not jnp.allclose(
                    out.astype(jnp.float32), ref.astype(jnp.float32), atol=tol):
                ok = False

    if ok:
        print("KERNEL_OK")
</pallas_src>

<mosaic_0001>
module attributes {stable_mosaic.version = 11 : i64} {
  func.func @_mask1d_append_halves_kernel(%arg0: i32, %arg1: i32, %arg2: i32, %arg3: memref<8x128xf32, #tpu.memory_space<vmem>>, %arg4: memref<8x128xf32, #tpu.memory_space<vmem>>, %arg5: memref<8x128xf32, #tpu.memory_space<vmem>>) attributes {dimension_semantics = [#tpu.dimension_semantics<parallel>, #tpu.dimension_semantics<parallel>, #tpu.dimension_semantics<arbitrary>], iteration_bounds = array<i64: 1, 1, 2>, scalar_prefetch = 0 : i64, scratch_operands = 0 : i64, tpu.core_type = #tpu.core_type<tc>, window_params = [{transform_indices = @transform_0, window_bounds = array<i64: 8, 128>}, {transform_indices = @transform_1, window_bounds = array<i64: 8, 128>}, {transform_indices = @transform_2, window_bounds = array<i64: 8, 128>}]} {
    %c0_i32 = arith.constant 0 : i32
    %0 = arith.cmpi eq, %arg2, %c0_i32 : i32
    %1 = arith.extui %0 : i1 to i32
    %c0_i32_0 = arith.constant 0 : i32
    %2 = arith.cmpi ne, %1, %c0_i32_0 : i32
    scf.if %2 {
      %c0 = arith.constant 0 : index
      %c0_2 = arith.constant 0 : index
      %6 = vector.load %arg3[%c0, %c0_2] : memref<8x128xf32, #tpu.memory_space<vmem>>, vector<8x128xf32>
      %c0_3 = arith.constant 0 : index
      %c0_4 = arith.constant 0 : index
      %7 = vector.load %arg4[%c0_3, %c0_4] : memref<8x128xf32, #tpu.memory_space<vmem>>, vector<8x128xf32>
      %8 = arith.mulf %6, %7 : vector<8x128xf32>
      %cst = arith.constant 1.000000e+00 : f32
      %9 = vector.broadcast %cst : f32 to vector<8x128xf32>
      %10 = arith.subf %9, %7 : vector<8x128xf32>
      %cst_5 = arith.constant 5.000000e-01 : f32
      %11 = vector.broadcast %cst_5 : f32 to vector<8x128xf32>
      %12 = arith.mulf %11, %10 : vector<8x128xf32>
      %13 = arith.addf %8, %12 : vector<8x128xf32>
      %c0_6 = arith.constant 0 : index
      %c0_7 = arith.constant 0 : index
      %14 = vector.load %arg5[%c0_6, %c0_7] : memref<8x128xf32, #tpu.memory_space<vmem>>, vector<8x128xf32>
      tpu.vector_store %arg5[%c0_6, %c0_7], %13 {strides = array<i32>} : memref<8x128xf32, #tpu.memory_space<vmem>>, vector<8x128xf32>,
    } else {
    }
    %c1_i32 = arith.constant 1 : i32
    %3 = arith.cmpi eq, %arg2, %c1_i32 : i32
    %4 = arith.extui %3 : i1 to i32
    %c0_i32_1 = arith.constant 0 : i32
    %5 = arith.cmpi ne, %4, %c0_i32_1 : i32
    scf.if %5 {
      %c0 = arith.constant 0 : index
      %c0_2 = arith.constant 0 : index
      %6 = vector.load %arg4[%c0, %c0_2] : memref<8x128xf32, #tpu.memory_space<vmem>>, vector<8x128xf32>
      %c0_3 = arith.constant 0 : index
      %c0_4 = arith.constant 0 : index
      %7 = vector.load %arg5[%c0_3, %c0_4] : memref<8x128xf32, #tpu.memory_space<vmem>>, vector<8x128xf32>
      tpu.vector_store %arg5[%c0_3, %c0_4], %6 {strides = array<i32>} : memref<8x128xf32, #tpu.memory_space<vmem>>, vector<8x128xf32>,
    } else {
    }
    return
  }
  func.func @transform_0(%arg0: i32, %arg1: i32, %arg2: i32) -> (i32, i32) {
    %c0_i32 = arith.constant 0 : i32
    return %arg0, %arg1 : i32, i32
  }
  func.func @transform_1(%arg0: i32, %arg1: i32, %arg2: i32) -> (i32, i32) {
    %c0_i32 = arith.constant 0 : i32
    return %arg0, %arg1 : i32, i32
  }
  func.func @transform_2(%arg0: i32, %arg1: i32, %arg2: i32) -> (i32, i32) {
    %c1_i32 = arith.constant 1 : i32
    %0 = arith.muli %arg2, %c1_i32 : i32
    %1 = arith.addi %0, %arg1 : i32
    %c0_i32 = arith.constant 0 : i32
    return %arg0, %1 : i32, i32
  }
}

</mosaic_0001>

<bundles_post_ra>
// kernel: tpu_custom_call.1
= control target key start
LH: loop header
LB: loop body
LE: loop exit
PB: predicated region body
PF: predicated region fallthrough
CT: control target
= control target key end

     0   :  { %7 = vsyncpa [#allocation3], 0  ;;  %s746_s0 = inlined_call_operand.hbm [shape: f32[8,128], index: 0, kind: input, shape index: {}]   ;;  %s747_s1 = inlined_call_operand.hbm [shape: f32[8,128], index: 1, kind: input, shape index: {}]   ;;  %s748_s2 = inlined_call_operand.hbm [shape: f32[8,256], index: 2, kind: output, shape index: {}]  }
   0x1   :  { %8 = vsyncpa [#allocation6], 0 }
   0x2   :  { %9 = vsyncpa [#allocation4], 0 }
   0x3   :  { %11 = vsyncpa [#allocation4 + $0x1], 0  ;;  %s568_s9 = smov 0   ;;  %s570_s10 = smov 0  }
   0x4   :  { %s572_s11 = smov 0   ;;  %s574_s12 = smov 0  }
   0x5   :  { %s576_s13 = smov 0   ;;  %s578_s14 = smov 0  }
   0x6 LB: > { %s315_s15 = sadd.s32 4294967295, %s548_s14   ;;  %s316_s16 = sadd.s32 4294967294, %s548_s14   ;;  %s548_s14 = sphi %s578_s14, %s17_s14   ;;  %s544_s13 = sphi %s576_s13, %s766_s13   ;;  %s540_s12 = sphi %s574_s12, %s765_s12   ;;  %s536_s11 = sphi %s572_s11, %s764_s11   ;;  %s532_s10 = sphi %s570_s10, %s763_s10   ;;  %s528_s9 = sphi %s568_s9, %s762_s9  }
   0x7   : > { %s29_s17 = sadd.s32 1, %s544_s13  ;;  %s103_s18 = sadd.s32 1, %s536_s11 }
   0x8   : > { %p30_p0 = scmp.ge.s32.totalorder %s29_s17, 2  ;;  %p113_p1 = scmp.ne.s32.totalorder %s536_s11, %s532_s10 }
   0x9   : > { %p114_p2 = scmp.eq.s32.totalorder %s315_s15, 1  ;;  %p119_p3 = scmp.ne.s32.totalorder %s532_s10, %s528_s9 }
   0xa   : > { %s768_s17 = smov (%p30_p0, %s29_s17), 0  ;;  %p120_p5 = scmp.eq.s32.totalorder %s316_s16, 1 }
   0xb   : > { %p608_p4 = por %p114_p2, %p113_p1  ;;  %s99_s20 = ssub.s32 %s544_s13, %s768_s17 }
   0xc   : > { %p317_p6 = scmp.ge.s32.totalorder %s548_s14, 1  ;;  %p101_p7 = scmp.eq.s32.totalorder %s99_s20, 0 }
   0xd   : > { %s753_s19 = scalar_select %p608_p4, 1, 0 }
   0xe   : > { %p615_p8 = por %p120_p5, %p119_p3  ;;  %p127_p9 = scmp.lt.s32.totalorder %s548_s14, 3 }
   0xf   : > { %s621_s22 = scalar_select %p101_p7, %s536_s11, %s103_s18  }
  0x10   : > { %s754_s21 = scalar_select %p615_p8, 1, 0 }
  0x11   : > { %p623_p10 = pnand %p317_p6, %p127_p9  ;;  %p627_p11 = scmp.eq.s32.totalorder %s315_s15, 0 }
  0x12   : > { %s550_s25 = smov [#allocation2]   ;;  %s551_s27 = smov [#allocation5]  }
  0x13   : > { %s755_s23 = scalar_select %p623_p10, 1, 0 }
  0x14   : > { %s756_s24 = scalar_select %p627_p11, 1, 0 }
  0x15   : > { %p340_p12 = pneg %p623_p10  ;;  %s143_s26 = sshll.u32 %s550_s25, 4  ;;  %s144_s26 = int_to_ptr.vmem [resolvable:$true] %s143_s26 }
  0x16   : > { %s157_s28 = sshll.u32 %s551_s27, 4  ;;  %s406_s4 = scalar_lea.hbm %s746_s0, 128  ;;  %s639_s28 = int_to_ptr.vmem [resolvable:$true] %s157_s28 }
  0x17   : > { %p635_p13 = pnand %p627_p11, %p340_p12  ;;  %p407_p0 = scmp.ne.s32.totalorder %s746_s0, %s406_s4 }
  0x18   : > { %p413_p5 = scmp.lt.u32.totalorder %s406_s4, %s746_s0 }
  0x19   : > { %p408_p1 = pneg %p635_p13 }
  0x1b   : > { %p409_p2 = pnand %p408_p1, %p407_p0 }
  0x1d   : > { %p410_p3 = pneg %p409_p2 }
  0x1f   : > { %p415_p6 = pnand %p413_p5, %p410_p3 }
  0x21   : > { %418 = shalt.err (!%p415_p6)
}
  0x22   : > { %s419_s15 = scalar_lea.vmem %s144_s26, 128  ;;  %p427_p8 = scmp.lt.s32.totalorder %s144_s26, %s144_s26 }
  0x23   : > { %p420_p7 = scmp.ne.s32.totalorder %s144_s26, %s419_s15  ;;  %p428_p4 = scmp.lt.s32.totalorder %s419_s15, %s419_s15 }
  0x25   : > { %p422_p9 = pnand %p420_p7, %p408_p1  ;;  %p429_p11 = por %p428_p4, %p427_p8 }
  0x27   : > { %p423_p12 = pneg %p422_p9 }
  0x29   : > { %p430_p10 = pnand %p429_p11, %p423_p12 }
  0x2b   : > { %433 = shalt.err (!%p430_p10)
}
  0x2c   : > { %343 = dma.hbm_to_vmem [thread:$0]  (!%p635_p13), %s746_s0, 128, %s144_s26, [#allocation3]  }
  0x2d   : > { %s434_s27 = scalar_lea.hbm %s747_s1, 128 }
  0x2e   : > { %p435_p0 = scmp.ne.s32.totalorder %s747_s1, %s434_s27  ;;  %p441_p10 = scmp.lt.u32.totalorder %s434_s27, %s747_s1 }
  0x30   : > { %p437_p4 = pnand %p435_p0, %p408_p1 }
  0x32   : > { %p438_p8 = pneg %p437_p4 }
  0x34   : > { %p443_p11 = pnand %p441_p10, %p438_p8 }
  0x36   : > { %446 = shalt.err (!%p443_p11)
}
  0x37   : > { %s447_s26 = scalar_lea.vmem %s639_s28, 128  ;;  %p455_p6 = scmp.lt.s32.totalorder %s639_s28, %s639_s28 }
  0x38   : > { %p448_p2 = scmp.ne.s32.totalorder %s639_s28, %s447_s26  ;;  %p456_p7 = scmp.lt.s32.totalorder %s447_s26, %s447_s26 }
  0x3a   : > { %p450_p3 = pnand %p448_p2, %p408_p1  ;;  %p457_p9 = por %p456_p7, %p455_p6 }
  0x3c   : > { %p451_p5 = pneg %p450_p3 }
  0x3e   : > { %p458_p12 = pnand %p457_p9, %p451_p5 }
  0x40   : > { %461 = shalt.err (!%p458_p12)
}
  0x41   : > { %346 = dma.hbm_to_vmem [thread:$0]  (!%p635_p13), %s747_s1, 128, %s639_s28, [#allocation6]  }
  0x42   : > { %p758_p0 = scmp.ne.s32.totalorder %s755_s23, 0 }
  0x43   : > { %p759_p4 = scmp.ne.s32.totalorder (!%p758_p0), %s756_s24, 0 }
  0x44   : > { %170 = sbr.rel (%p758_p0) target bundleno = 121 (0x79), region = 28 }
  0x4b   : > { %515 = dma.done.wait (%p759_p4), [#allocation3], 128  }
  0x4c   : > { %517 = vsyncadd (%p759_p4), [#allocation3], 4294967168 }
  0x4d   : > { %519 = dma.done.wait (%p759_p4), [#allocation6], 128  }
  0x4e   : > { %521 = vsyncadd (%p759_p4), [#allocation6], 4294967168  ;;  %s188_s29 = sand.u32 1, %s532_s10   ;;  %p324_p13 = scmp.ne.s32.totalorder %s540_s12, 0 }
  0x4f   : > { %s323_s8 = sshll.u32 %s188_s29, 3  ;;  %v196_v0 = vld [vmem:[#allocation2] sm:$0xff] (!%p324_p13)  ;;  %v197_v1 = vld [vmem:[#allocation5] sm:$0xff] (!%p324_p13) }
  0x50   : > { %s190_s15 = scalar_lea.vmem [#allocation7], %s323_s8  ;;  %195 = sbr.rel (%p324_p13) target bundleno = 87 (0x57), region = 40  ;;  %v198_v2 = vmul.f32 (!%p324_p13), %v197_v1, %v196_v0  ;;  %v199_v3 = vsub.f32 (!%p324_p13), 1.0, %v197_v1 }
  0x52   : > { %v200_v4 = vmul.f32 (!%p324_p13), 0.5, %v199_v3 }
  0x54   : > { %v201_v5 = vadd.f32 (!%p324_p13), %v200_v4, %v198_v2 }
  0x56   : > { %202 = vst [vmem:[%s190_s15] sm:$0xff] (!%p324_p13), %v201_v5 }
  0x57 PF: > { %p325_p1 = scmp.ne.s32.totalorder %s540_s12, 1 }
  0x58   : > { %v207_v6 = vld [vmem:[#allocation5] sm:$0xff] (!%p325_p1) }
  0x59   : > { %206 = sbr.rel (%p325_p1) target bundleno = 96 (0x60), region = 44  ;;  %208 = vst [vmem:[%s190_s15] sm:$0xff] (!%p325_p1), %v207_v6 }
  0x60 PF: > { %s327_s23 = sshll.u32 %s540_s12, 7  ;;  %s226_s18 = sshll.u32 %s190_s15, 4  ;;  %s227_s18 = int_to_ptr.vmem [resolvable:$true] %s226_s18 }
  0x61   : > { %s705_s16 = scalar_lea.hbm %s748_s2, %s327_s23  ;;  %s210_s20 = scalar_lea.sflag [#allocation4], %s188_s29 }
  0x62   : > { %s462_s25 = scalar_lea.vmem %s227_s18, 128  ;;  %p760_p10 = scmp.ne.s32.totalorder %s753_s19, 0 }
  0x63   : > { %p463_p8 = scmp.ne.s32.totalorder %s227_s18, %s462_s25  ;;  %s552_s27 = smov [#allocation7]  }
  0x64   : > { %s466_s30 = sshll.u32 %s552_s27, 4  ;;  %s467_s30 = int_to_ptr.vmem [resolvable:$false] %s466_s30 }
  0x65   : > { %p464_p11 = pnand %p463_p8, %p760_p10  ;;  %s468_s3 = scalar_lea.vmem %s467_s30, 256 }
  0x66   : > { %p469_p3 = scmp.lt.s32.totalorder %s227_s18, %s467_s30  ;;  %p470_p5 = scmp.lt.s32.totalorder %s468_s3, %s462_s25 }
  0x67   : > { %p465_p2 = pneg %p464_p11 }
  0x68   : > { %p471_p6 = por %p470_p5, %p469_p3 }
  0x6a   : > { %p472_p7 = pnand %p471_p6, %p465_p2 }
  0x6c   : > { %475 = shalt.err (!%p472_p7)
}
  0x6d   : > { %s476_s12 = scalar_lea.hbm %s705_s16, 128  ;;  %s480_s26 = scalar_lea.hbm %s748_s2, 256 }
  0x6e   : > { %p477_p9 = scmp.ne.s32.totalorder %s705_s16, %s476_s12  ;;  %p481_p4 = scmp.lt.u32.totalorder %s705_s16, %s748_s2 }
  0x6f   : > { %p482_p13 = scmp.lt.u32.totalorder %s480_s26, %s476_s12  ;;  %p484_p8 = scmp.lt.u32.totalorder %s476_s12, %s705_s16 }
  0x70   : > { %p478_p12 = pnand %p477_p9, %p760_p10 }
  0x71   : > { %p483_p1 = por %p482_p13, %p481_p4 }
  0x72   : > { %p479_p0 = pneg %p478_p12 }
  0x73   : > { %p485_p11 = por %p484_p8, %p483_p1 }
  0x75   : > { %p486_p2 = pnand %p485_p11, %p479_p0 }
  0x77   : > { %489 = shalt.err (!%p486_p2)
}
  0x78   : > { %338 = dma.vmem_to_hbm [thread:$0]  (%p760_p10), %s227_s18, 128, %s705_s16, %s210_s20  }
  0x79 PF: > { %p355_p3 = scmp.ge.s32.totalorder %s548_s14, 2  ;;  %s238_s29 = sand.u32 1, %s528_s9  }
  0x7a   : > { %p761_p5 = scmp.ne.s32.totalorder %s754_s21, 0  ;;  %s239_s8 = scalar_lea.sflag [#allocation4], %s238_s29 }
  0x7c   : > { %p348_p6 = pnand %p355_p3, %p761_p5 }
  0x7e   : > { %523 = dma.done.wait (!%p348_p6), %s239_s8, 128  }
  0x7f   : > { %525 = vsyncadd (!%p348_p6), %s239_s8, 4294967168  ;;  %s17_s14 = sadd.s32 1, %s548_s14   ;;  %s762_s9 = smov %s532_s10 }
  0x80   : > { %p14_p7 = scmp.ge.s32.totalorder %s17_s14, 4   ;;  %s763_s10 = smov %s536_s11 }
  0x81   : > { %s764_s11 = smov %s621_s22  ;;  %s765_s12 = smov %s544_s13 }
  0x82   : > { %s766_s13 = smov %s768_s17  ;;  %16 = sbr.rel (!%p14_p7) target bundleno = 6 (0x6), region = 79 }
  0x89   :  { %244 = vsyncpa [#allocation3], 1 }
  0x8a   :  { %246 = vsyncpa [#allocation3 + $0x1], 1 }
  0x8b   :  { %247 = vsyncpa [#allocation6], 1 }
  0x8c   :  { %248 = vsyncpa [#allocation4], 1 }
  0x8d   :  { %250 = vsyncpa [#allocation4 + $0x1], 1 }

</bundles_post_ra>
